<compile_context>
chip_gen: v6e
topology: v6e:2x2x1
jax: 0.10.0
libtpu: 0.0.40
codegen_flags: <defaults>
</compile_context>

<pallas_src>
import jax
import jax.numpy as jnp
from jax import lax
from jax.experimental import pallas as pl
from jax.experimental.pallas import tpu as pltpu

INPUT_SIZE = 4
HIDDEN_SIZE = 32
HIDDEN_DEPTH = 3
OUTPUT_SIZE = 2
BATCH = 8

_BN_EPS = 1e-5
_SP_THRESHOLD = 20.0  # PyTorch Softplus default threshold (beta=1)

# ---- packed-parameter slab layout (rows of a (N_ROWS, HIDDEN_SIZE) array) ----
ROW_W12 = 0                                          # fused head weight (INPUT_SIZE rows, padded to 8)
ROW_WH = 8                                           # hidden weights, HIDDEN_DEPTH * HIDDEN_SIZE rows
ROW_WL = ROW_WH + HIDDEN_DEPTH * HIDDEN_SIZE         # fused tail weight, HIDDEN_SIZE rows (cols padded)
ROW_B12 = ROW_WL + HIDDEN_SIZE                       # fused head bias, 1 row
ROW_BH = ROW_B12 + 1                                 # effective hidden biases, HIDDEN_DEPTH rows
ROW_BL = ROW_BH + HIDDEN_DEPTH                       # fused tail bias, 1 row (cols padded)
N_ROWS = ((ROW_BL + 1 + 7) // 8) * 8                 # pad total rows to multiple of 8 sublanes


def _softplus(x):
    # Matches torch.nn.Softplus(beta=1, threshold=20)
    return jnp.where(x > _SP_THRESHOLD, x,
                     jnp.log1p(jnp.exp(jnp.minimum(x, _SP_THRESHOLD))))


def _mlp_kernel(x_ref, p_ref, o_ref):
    H = HIDDEN_SIZE

    # Fused head Linear: (B, in) @ (in, H) + b
    out = jnp.dot(x_ref[...], p_ref[ROW_W12:ROW_W12 + INPUT_SIZE, :],
                  preferred_element_type=jnp.float32) + p_ref[ROW_B12:ROW_B12 + 1, :]

    # Static unrolled hidden loop: BN (train mode, gamma/beta folded) + Linear.
    for i in range(HIDDEN_DEPTH):
        m = jnp.mean(out, axis=0, keepdims=True)
        m2 = jnp.mean(out * out, axis=0, keepdims=True)
        inv = lax.rsqrt(m2 - m * m + _BN_EPS)
        out = (out - m) * inv
        r = ROW_WH + i * H
        out = jnp.dot(out, p_ref[r:r + H, :],
                      preferred_element_type=jnp.float32) \
            + p_ref[ROW_BH + i:ROW_BH + i + 1, :]

    out = jnp.tanh(out)

    # Fused tail Linear (columns zero-padded from OUTPUT_SIZE to H).
    out = jnp.dot(out, p_ref[ROW_WL:ROW_WL + H, :],
                  preferred_element_type=jnp.float32) + p_ref[ROW_BL:ROW_BL + 1, :]

    o_ref[...] = _softplus(out[:, :OUTPUT_SIZE])


def neural_net_forward(x, packed_params):
    """x: (B, INPUT_SIZE) f32; packed_params: (N_ROWS, HIDDEN_SIZE) f32 slab."""
    return pl.pallas_call(
        _mlp_kernel,
        out_shape=jax.ShapeDtypeStruct((x.shape[0], OUTPUT_SIZE), jnp.float32),
        in_specs=[pl.BlockSpec(memory_space=pltpu.MemorySpace.VMEM),
                  pl.BlockSpec(memory_space=pltpu.MemorySpace.VMEM)],
        out_specs=pl.BlockSpec(memory_space=pltpu.MemorySpace.VMEM),
    )(x, packed_params)


def init_params(key):
    """PyTorch-equivalent parameters (Linear weights stored transposed as
    (in_features, out_features); biases / BN params as 2-D rows)."""
    ks = jax.random.split(key, 10)

    def u(k, shape, fan_in):
        bound = 1.0 / jnp.sqrt(fan_in)  # PyTorch-style uniform init range
        return jax.random.uniform(k, shape, jnp.float32, -bound, bound)

    return {
        "w_f1": u(ks[0], (INPUT_SIZE, 10), INPUT_SIZE),
        "b_f1": u(ks[1], (1, 10), INPUT_SIZE),
        "w_f2": u(ks[2], (10, HIDDEN_SIZE), 10),
        "b_f2": u(ks[3], (1, HIDDEN_SIZE), 10),
        "bn_gamma": jnp.ones((HIDDEN_DEPTH, HIDDEN_SIZE), jnp.float32),
        "bn_beta": jnp.zeros((HIDDEN_DEPTH, HIDDEN_SIZE), jnp.float32),
        "w_h": u(ks[4], (HIDDEN_DEPTH, HIDDEN_SIZE, HIDDEN_SIZE), HIDDEN_SIZE),
        "b_h": u(ks[5], (HIDDEN_DEPTH, HIDDEN_SIZE), HIDDEN_SIZE),
        "w_l1": u(ks[6], (HIDDEN_SIZE, 10), HIDDEN_SIZE),
        "b_l1": u(ks[7], (1, 10), HIDDEN_SIZE),
        "w_l2": u(ks[8], (10, OUTPUT_SIZE), 10),
        "b_l2": u(ks[9], (1, OUTPUT_SIZE), 10),
    }


def pack_params(p):
    """One-time host-side fusion + packing into a single (N_ROWS, H) VMEM slab.

    Exact (up to f32 rounding) algebraic rewrites:
      head:  W12 = w_f1 @ w_f2,           b12 = b_f1 @ w_f2 + b_f2
      hidden: W_h_eff = gamma[:,None]*w_h, b_h_eff = beta @ w_h + b_h
      tail:  W_l  = w_l1 @ w_l2,           b_l  = b_l1 @ w_l2 + b_l2
    """
    H = HIDDEN_SIZE
    W12 = p["w_f1"] @ p["w_f2"]                                   # (in, H)
    b12 = p["b_f1"] @ p["w_f2"] + p["b_f2"]                       # (1, H)
    Wh = p["bn_gamma"][:, :, None] * p["w_h"]                     # (D, H, H)
    bh = jnp.einsum("dh,dhk->dk", p["bn_beta"], p["w_h"]) + p["b_h"]  # (D, H)
    Wl = p["w_l1"] @ p["w_l2"]                                    # (H, out)
    bl = p["b_l1"] @ p["w_l2"] + p["b_l2"]                        # (1, out)

    slab = jnp.zeros((N_ROWS, H), jnp.float32)
    slab = slab.at[ROW_W12:ROW_W12 + INPUT_SIZE, :].set(W12)
    slab = slab.at[ROW_WH:ROW_WH + HIDDEN_DEPTH * H, :].set(
        Wh.reshape(HIDDEN_DEPTH * H, H))
    slab = slab.at[ROW_WL:ROW_WL + H, :OUTPUT_SIZE].set(Wl)
    slab = slab.at[ROW_B12, :].set(b12[0])
    slab = slab.at[ROW_BH:ROW_BH + HIDDEN_DEPTH, :].set(bh)
    slab = slab.at[ROW_BL, :OUTPUT_SIZE].set(bl[0])
    return slab


def reference_forward(x, p):
    """Pure-JAX reference of the ORIGINAL (unfused) module, training-mode BN."""
    out = x @ p["w_f1"] + p["b_f1"]
    out = out @ p["w_f2"] + p["b_f2"]
    for i in range(HIDDEN_DEPTH):
        mean = out.mean(axis=0, keepdims=True)
        var = ((out - mean) ** 2).mean(axis=0, keepdims=True)
        out = (out - mean) / jnp.sqrt(var + _BN_EPS) * p["bn_gamma"][i] + p["bn_beta"][i]
        out = out @ p["w_h"][i] + p["b_h"][i:i + 1]
    out = jnp.tanh(out)
    out = out @ p["w_l1"] + p["b_l1"]
    out = out @ p["w_l2"] + p["b_l2"]
    return _softplus(out)


if __name__ == "__main__":
    key = jax.random.PRNGKey(0)
    k_x, k_p = jax.random.split(key)
    x = jax.random.normal(k_x, (BATCH, INPUT_SIZE), jnp.float32)
    params = init_params(k_p)
    packed = pack_params(params)

    out = neural_net_forward(x, packed)
    out = jax.block_until_ready(out)

    ref = reference_forward(x, params)
    assert out.shape == (BATCH, OUTPUT_SIZE)
    assert jnp.allclose(out, ref, atol=1e-4, rtol=1e-4), "mismatch vs reference"

    print("KERNEL_OK")
</pallas_src>

<mosaic_0001>
module attributes {stable_mosaic.version = 11 : i64} {
  func.func @_mlp_kernel(%arg0: memref<8x4xf32, #tpu.memory_space<vmem>>, %arg1: memref<144x32xf32, #tpu.memory_space<vmem>>, %arg2: memref<8x2xf32, #tpu.memory_space<vmem>>) attributes {dimension_semantics = [], scalar_prefetch = 0 : i64, scratch_operands = 0 : i64, tpu.core_type = #tpu.core_type<tc>} {
    %c0 = arith.constant 0 : index
    %c0_0 = arith.constant 0 : index
    %0 = vector.load %arg0[%c0, %c0_0] : memref<8x4xf32, #tpu.memory_space<vmem>>, vector<8x4xf32>
    %c0_1 = arith.constant 0 : index
    %c0_2 = arith.constant 0 : index
    %1 = vector.load %arg1[%c0_1, %c0_2] : memref<144x32xf32, #tpu.memory_space<vmem>>, vector<4x32xf32>
    %cst = arith.constant dense<0.000000e+00> : vector<8x32xf32>
    %2 = tpu.matmul %0, %1, %cst {dimension_numbers = #tpu.dot_dimension_numbers<[1], [0], [0], [1], [0, 0, 1, 1], [], []>} : vector<8x4xf32>, vector<4x32xf32>, vector<8x32xf32> -> vector<8x32xf32>
    %c136 = arith.constant 136 : index
    %c0_3 = arith.constant 0 : index
    %3 = vector.load %arg1[%c136, %c0_3] : memref<144x32xf32, #tpu.memory_space<vmem>>, vector<1x32xf32>
    %4 = vector.broadcast %3 : vector<1x32xf32> to vector<8x32xf32>
    %5 = arith.addf %2, %4 : vector<8x32xf32>
    %cst_4 = arith.constant dense<0.000000e+00> : vector<32xf32>
    %6 = vector.multi_reduction <add>, %5, %cst_4 [0] : vector<8x32xf32> to vector<32xf32>
    %7 = vector.shape_cast %6 : vector<32xf32> to vector<1x32xf32>
    %cst_5 = arith.constant 8.000000e+00 : f32
    %8 = vector.broadcast %cst_5 : f32 to vector<1x32xf32>
    %9 = arith.divf %7, %8 : vector<1x32xf32>
    %10 = arith.mulf %5, %5 : vector<8x32xf32>
    %cst_6 = arith.constant dense<0.000000e+00> : vector<32xf32>
    %11 = vector.multi_reduction <add>, %10, %cst_6 [0] : vector<8x32xf32> to vector<32xf32>
    %12 = vector.shape_cast %11 : vector<32xf32> to vector<1x32xf32>
    %cst_7 = arith.constant 8.000000e+00 : f32
    %13 = vector.broadcast %cst_7 : f32 to vector<1x32xf32>
    %14 = arith.divf %12, %13 : vector<1x32xf32>
    %15 = arith.mulf %9, %9 : vector<1x32xf32>
    %16 = arith.subf %14, %15 : vector<1x32xf32>
    %cst_8 = arith.constant 9.99999974E-6 : f32
    %17 = vector.broadcast %cst_8 : f32 to vector<1x32xf32>
    %18 = arith.addf %16, %17 : vector<1x32xf32>
    %19 = math.rsqrt %18 : vector<1x32xf32>
    %20 = vector.broadcast %9 : vector<1x32xf32> to vector<8x32xf32>
    %21 = arith.subf %5, %20 : vector<8x32xf32>
    %22 = vector.broadcast %19 : vector<1x32xf32> to vector<8x32xf32>
    %23 = arith.mulf %21, %22 : vector<8x32xf32>
    %c8 = arith.constant 8 : index
    %c0_9 = arith.constant 0 : index
    %24 = vector.load %arg1[%c8, %c0_9] : memref<144x32xf32, #tpu.memory_space<vmem>>, vector<32x32xf32>
    %cst_10 = arith.constant dense<0.000000e+00> : vector<8x32xf32>
    %25 = tpu.matmul %23, %24, %cst_10 {dimension_numbers = #tpu.dot_dimension_numbers<[1], [0], [0], [1], [0, 0, 1, 1], [], []>} : vector<8x32xf32>, vector<32x32xf32>, vector<8x32xf32> -> vector<8x32xf32>
    %c137 = arith.constant 137 : index
    %c0_11 = arith.constant 0 : index
    %26 = vector.load %arg1[%c137, %c0_11] : memref<144x32xf32, #tpu.memory_space<vmem>>, vector<1x32xf32>
    %27 = vector.broadcast %26 : vector<1x32xf32> to vector<8x32xf32>
    %28 = arith.addf %25, %27 : vector<8x32xf32>
    %cst_12 = arith.constant dense<0.000000e+00> : vector<32xf32>
    %29 = vector.multi_reduction <add>, %28, %cst_12 [0] : vector<8x32xf32> to vector<32xf32>
    %30 = vector.shape_cast %29 : vector<32xf32> to vector<1x32xf32>
    %cst_13 = arith.constant 8.000000e+00 : f32
    %31 = vector.broadcast %cst_13 : f32 to vector<1x32xf32>
    %32 = arith.divf %30, %31 : vector<1x32xf32>
    %33 = arith.mulf %28, %28 : vector<8x32xf32>
    %cst_14 = arith.constant dense<0.000000e+00> : vector<32xf32>
    %34 = vector.multi_reduction <add>, %33, %cst_14 [0] : vector<8x32xf32> to vector<32xf32>
    %35 = vector.shape_cast %34 : vector<32xf32> to vector<1x32xf32>
    %cst_15 = arith.constant 8.000000e+00 : f32
    %36 = vector.broadcast %cst_15 : f32 to vector<1x32xf32>
    %37 = arith.divf %35, %36 : vector<1x32xf32>
    %38 = arith.mulf %32, %32 : vector<1x32xf32>
    %39 = arith.subf %37, %38 : vector<1x32xf32>
    %cst_16 = arith.constant 9.99999974E-6 : f32
    %40 = vector.broadcast %cst_16 : f32 to vector<1x32xf32>
    %41 = arith.addf %39, %40 : vector<1x32xf32>
    %42 = math.rsqrt %41 : vector<1x32xf32>
    %43 = vector.broadcast %32 : vector<1x32xf32> to vector<8x32xf32>
    %44 = arith.subf %28, %43 : vector<8x32xf32>
    %45 = vector.broadcast %42 : vector<1x32xf32> to vector<8x32xf32>
    %46 = arith.mulf %44, %45 : vector<8x32xf32>
    %c40 = arith.constant 40 : index
    %c0_17 = arith.constant 0 : index
    %47 = vector.load %arg1[%c40, %c0_17] : memref<144x32xf32, #tpu.memory_space<vmem>>, vector<32x32xf32>
    %cst_18 = arith.constant dense<0.000000e+00> : vector<8x32xf32>
    %48 = tpu.matmul %46, %47, %cst_18 {dimension_numbers = #tpu.dot_dimension_numbers<[1], [0], [0], [1], [0, 0, 1, 1], [], []>} : vector<8x32xf32>, vector<32x32xf32>, vector<8x32xf32> -> vector<8x32xf32>
    %c138 = arith.constant 138 : index
    %c0_19 = arith.constant 0 : index
    %49 = vector.load %arg1[%c138, %c0_19] : memref<144x32xf32, #tpu.memory_space<vmem>>, vector<1x32xf32>
    %50 = vector.broadcast %49 : vector<1x32xf32> to vector<8x32xf32>
    %51 = arith.addf %48, %50 : vector<8x32xf32>
    %cst_20 = arith.constant dense<0.000000e+00> : vector<32xf32>
    %52 = vector.multi_reduction <add>, %51, %cst_20 [0] : vector<8x32xf32> to vector<32xf32>
    %53 = vector.shape_cast %52 : vector<32xf32> to vector<1x32xf32>
    %cst_21 = arith.constant 8.000000e+00 : f32
    %54 = vector.broadcast %cst_21 : f32 to vector<1x32xf32>
    %55 = arith.divf %53, %54 : vector<1x32xf32>
    %56 = arith.mulf %51, %51 : vector<8x32xf32>
    %cst_22 = arith.constant dense<0.000000e+00> : vector<32xf32>
    %57 = vector.multi_reduction <add>, %56, %cst_22 [0] : vector<8x32xf32> to vector<32xf32>
    %58 = vector.shape_cast %57 : vector<32xf32> to vector<1x32xf32>
    %cst_23 = arith.constant 8.000000e+00 : f32
    %59 = vector.broadcast %cst_23 : f32 to vector<1x32xf32>
    %60 = arith.divf %58, %59 : vector<1x32xf32>
    %61 = arith.mulf %55, %55 : vector<1x32xf32>
    %62 = arith.subf %60, %61 : vector<1x32xf32>
    %cst_24 = arith.constant 9.99999974E-6 : f32
    %63 = vector.broadcast %cst_24 : f32 to vector<1x32xf32>
    %64 = arith.addf %62, %63 : vector<1x32xf32>
    %65 = math.rsqrt %64 : vector<1x32xf32>
    %66 = vector.broadcast %55 : vector<1x32xf32> to vector<8x32xf32>
    %67 = arith.subf %51, %66 : vector<8x32xf32>
    %68 = vector.broadcast %65 : vector<1x32xf32> to vector<8x32xf32>
    %69 = arith.mulf %67, %68 : vector<8x32xf32>
    %c72 = arith.constant 72 : index
    %c0_25 = arith.constant 0 : index
    %70 = vector.load %arg1[%c72, %c0_25] : memref<144x32xf32, #tpu.memory_space<vmem>>, vector<32x32xf32>
    %cst_26 = arith.constant dense<0.000000e+00> : vector<8x32xf32>
    %71 = tpu.matmul %69, %70, %cst_26 {dimension_numbers = #tpu.dot_dimension_numbers<[1], [0], [0], [1], [0, 0, 1, 1], [], []>} : vector<8x32xf32>, vector<32x32xf32>, vector<8x32xf32> -> vector<8x32xf32>
    %c139 = arith.constant 139 : index
    %c0_27 = arith.constant 0 : index
    %72 = vector.load %arg1[%c139, %c0_27] : memref<144x32xf32, #tpu.memory_space<vmem>>, vector<1x32xf32>
    %73 = vector.broadcast %72 : vector<1x32xf32> to vector<8x32xf32>
    %74 = arith.addf %71, %73 : vector<8x32xf32>
    %75 = math.tanh %74 : vector<8x32xf32>
    %c104 = arith.constant 104 : index
    %c0_28 = arith.constant 0 : index
    %76 = vector.load %arg1[%c104, %c0_28] : memref<144x32xf32, #tpu.memory_space<vmem>>, vector<32x32xf32>
    %cst_29 = arith.constant dense<0.000000e+00> : vector<8x32xf32>
    %77 = tpu.matmul %75, %76, %cst_29 {dimension_numbers = #tpu.dot_dimension_numbers<[1], [0], [0], [1], [0, 0, 1, 1], [], []>} : vector<8x32xf32>, vector<32x32xf32>, vector<8x32xf32> -> vector<8x32xf32>
    %c140 = arith.constant 140 : index
    %c0_30 = arith.constant 0 : index
    %78 = vector.load %arg1[%c140, %c0_30] : memref<144x32xf32, #tpu.memory_space<vmem>>, vector<1x32xf32>
    %79 = vector.broadcast %78 : vector<1x32xf32> to vector<8x32xf32>
    %80 = arith.addf %77, %79 : vector<8x32xf32>
    %81 = vector.extract_strided_slice %80 {offsets = [0, 0], sizes = [8, 2], strides = [1, 1]} : vector<8x32xf32> to vector<8x2xf32>
    %cst_31 = arith.constant 2.000000e+01 : f32
    %82 = vector.broadcast %cst_31 : f32 to vector<8x2xf32>
    %83 = arith.cmpf ogt, %81, %82 : vector<8x2xf32>
    %cst_32 = arith.constant 2.000000e+01 : f32
    %84 = vector.broadcast %cst_32 : f32 to vector<8x2xf32>
    %85 = arith.minimumf %81, %84 : vector<8x2xf32>
    %86 = math.exp %85 : vector<8x2xf32>
    %87 = math.log1p %86 : vector<8x2xf32>
    %88 = arith.select %83, %81, %87 : vector<8x2xi1>, vector<8x2xf32>
    %c0_33 = arith.constant 0 : index
    %c0_34 = arith.constant 0 : index
    %89 = vector.load %arg2[%c0_33, %c0_34] : memref<8x2xf32, #tpu.memory_space<vmem>>, vector<8x2xf32>
    tpu.vector_store %arg2[%c0_33, %c0_34], %88 {strides = array<i32>} : memref<8x2xf32, #tpu.memory_space<vmem>>, vector<8x2xf32>,
    return
  }
}

</mosaic_0001>

<bundles_post_ra>
// kernel: tpu_custom_call.1
= control target key start
LH: loop header
LB: loop body
LE: loop exit
PB: predicated region body
PF: predicated region fallthrough
CT: control target
= control target key end

     0   :  { %vm22_vm0 = vcmask 1043456   ;;  %vm18_vm1 = vcmask 31744   ;;  %v612_v0 = vmov 0.0   ;;  %vm613_vm2 = vmmov 0   ;;  %s738_s1 = inlined_call_operand.vmem [shape: f32[144,32], index: 1, kind: input, shape index: {}]   ;;  %s739_s0 = inlined_call_operand.vmem [shape: f32[8,4], index: 0, kind: input, shape index: {}]   ;;  %s740_s2 = inlined_call_operand.vmem [shape: f32[8,2], index: 2, kind: output, shape index: {}]  }
   0x1   :  { %549 = vmatprep.subr.mxu0 %v612_v0  ;;  %v12_v1 = vld [vmem:[%s738_s1] sm:$0xf]  ;;  %551 = vmatprep.mubr.msk.f32.mxu0 %vm613_vm2, %v612_v0  ;;  %v123_v4 = vld [vmem:[%s738_s1 + $0x18] sm:$0xff]  ;;  %v122_v5 = vld [vmem:[%s738_s1 + $0x10] sm:$0xff]  ;;  %vm96_vm3 = vcmask 261120   ;;  %vm510_vm5 = vcmask 15360  }
   0x2   :  { %v11_v2 = vld [vmem:[%s739_s0] sm:$0xff]  ;;  %550 = vmatpush3.msk.msra.mxu0 %vm22_vm0, %v12_v1  ;;  %554 = vmatprep.subr.mxu1 %v612_v0  ;;  %v121_v6 = vld [vmem:[%s738_s1 + $0x8] sm:$0xff]  ;;  %v228_v35 = vld [vmem:[%s738_s1 + $0x38] sm:$0xff] }
   0x3   :  { %552 = vmatmul.mubr.msk.f32.vlgmr.msra.gmra.mxu0 %vm18_vm1, %v11_v2  ;;  %562 = vmatprep.mubr.msk.f32.mxu1 %vm613_vm2, %v612_v0  ;;  %v124_v3 = vld [vmem:[%s738_s1 + $0x20] sm:$0xff]  ;;  %v516_v7 = vld [vmem:[%s738_s1 + $0x88] ss:$0 sm:$0xff]  ;;  %v227_v36 = vld [vmem:[%s738_s1 + $0x30] sm:$0xff] }
   0x4   :  { %565 = vmatprep.subr.mxu0 %v612_v0  ;;  %573 = vmatprep.mubr.msk.f32.mxu0 %vm613_vm2, %v612_v0  ;;  %v229_v34 = vld [vmem:[%s738_s1 + $0x40] sm:$0xff]  ;;  %v226_v37 = vld [vmem:[%s738_s1 + $0x28] sm:$0xff] }
   0x5   :  { %555 = vmatpush3.msra.mxu1 %v124_v3  ;;  %566 = vmatpush3.msra.mxu0 %v229_v34  ;;  %v519_v38 = vld [vmem:[%s738_s1 + $0x89] ss:$0 sm:$0xff]  ;;  %v334_v2 = vld [vmem:[%s738_s1 + $0x60] sm:$0xff]  ;;  %v333_v3 = vld [vmem:[%s738_s1 + $0x58] sm:$0xff] }
   0x6   :  { %556 = vmatprep.subr.mxu1 %v612_v0  ;;  %567 = vmatprep.subr.mxu0 %v612_v0  ;;  %v416_v34 = vld [vmem:[%s738_s1 + $0x78] sm:$0xff] }
   0x7   :  { %557 = vmatpush3.msra.mxu1 %v123_v4  ;;  %568 = vmatpush3.msra.mxu0 %v228_v35  ;;  %v332_v4 = vld [vmem:[%s738_s1 + $0x50] sm:$0xff] }
   0x8   :  { %558 = vmatprep.subr.mxu1 %v612_v0  ;;  %569 = vmatprep.subr.mxu0 %v612_v0  ;;  %v415_v35 = vld [vmem:[%s738_s1 + $0x70] sm:$0xff] }
   0x9   :  { %559 = vmatpush3.msra.mxu1 %v122_v5  ;;  %570 = vmatpush3.msra.mxu0 %v227_v36  ;;  %v331_v5 = vld [vmem:[%s738_s1 + $0x48] sm:$0xff] }
   0xa   :  { %560 = vmatprep.subr.mxu1 %v612_v0  ;;  %571 = vmatprep.subr.mxu0 %v612_v0  ;;  %v414_v36 = vld [vmem:[%s738_s1 + $0x68] sm:$0xff] }
   0xb   :  { %561 = vmatpush3.msra.mxu1 %v121_v6  ;;  %572 = vmatpush3.msra.mxu0 %v226_v37  ;;  %v521_v6 = vld [vmem:[%s738_s1 + $0x8a] ss:$0 sm:$0xff]  ;;  %v523_v37 = vld [vmem:[%s738_s1 + $0x8b] ss:$0 sm:$0xff] }
   0xc   :  { %576 = vmatprep.subr.mxu1 %v612_v0  ;;  %587 = vmatprep.subr.mxu0 %v612_v0 }
  0xc3   :  { %v92_v8 = vpop.f32.mrf.mxu0 }
  0xc4   :  { %v93_v9 = vadd.f32 %v516_v7, %v92_v8 }
  0xc5   :  { %v553_v10 = vpop.f32.mrf.mxu0 }
  0xc6   :  { %v97_v11 = vsel %vm96_vm3, %v93_v9, 0.0  ;;  %v106_v12 = vmul.f32 %v93_v9, %v93_v9 }
  0xc7   :  { %v98_v13 = vrot.slane %v97_v11, 4 }
  0xc8   :  { %v107_v14 = vsel %vm96_vm3, %v106_v12, 0.0 }
  0xc9   :  { %v99_v15 = vadd.f32 %v98_v13, %v97_v11  ;;  %v108_v16 = vrot.slane %v107_v14, 4 }
  0xcb   :  { %v100_v17 = vrot.slane %v99_v15, 2  ;;  %v109_v18 = vadd.f32 %v108_v16, %v107_v14 }
  0xcd   :  { %v101_v19 = vadd.f32 %v100_v17, %v99_v15  ;;  %v110_v20 = vrot.slane %v109_v18, 2 }
  0xcf   :  { %v102_v21 = vrot.slane %v101_v19, 1  ;;  %v111_v22 = vadd.f32 %v110_v20, %v109_v18 }
  0xd1   :  { %v103_v23 = vadd.f32 %v102_v21, %v101_v19  ;;  %v112_v24 = vrot.slane %v111_v22, 1 }
  0xd3   :  { %v105_v25 = vmul.f32 0.125, %v103_v23  ;;  %v113_v26 = vadd.f32 %v112_v24, %v111_v22 }
  0xd5   :  { %v114_v27 = vmul.f32 0.125, %v113_v26  ;;  %v115_v28 = vmul.f32 %v105_v25, %v105_v25  ;;  %v119_v31 = vsub.f32 %v93_v9, %v105_v25 }
  0xd7   :  { %v116_v29 = vsub.f32 %v114_v27, %v115_v28 }
  0xd9   :  { %v117_v30 = vadd.f32 1e-05, %v116_v29 }
  0xdb   :  { %600 = vrsqrt.f32 %v117_v30 }
  0xe8   :  { %v601_v32 = vpop.eup %600 }
  0xe9   :  { %v120_v33 = vmul.f32 %v601_v32, %v119_v31 }
  0xeb   :  { %563 = vmatmul.mubr.msk.f32.vlgmr.msra.gmra.mxu1 %vm96_vm3, %v120_v33  ;;  %v417_v33 = vld [vmem:[%s738_s1 + $0x80] sm:$0xff] }
  0xec   :  { %584 = vmatprep.mubr.msk.f32.mxu1 %vm613_vm2, %v612_v0  ;;  %577 = vmatpush3.msra.mxu1 %v334_v2 }
  0xed   :  { %578 = vmatprep.subr.mxu1 %v612_v0 }
  0xee   :  { %579 = vmatpush3.msra.mxu1 %v333_v3 }
  0xef   :  { %580 = vmatprep.subr.mxu1 %v612_v0 }
  0xf0   :  { %581 = vmatpush3.msra.mxu1 %v332_v4 }
  0xf1   :  { %582 = vmatprep.subr.mxu1 %v612_v0 }
  0xf2   :  { %583 = vmatpush3.msra.mxu1 %v331_v5 }
 0x1ab   :  { %v199_v39 = vpop.f32.mrf.mxu1 }
 0x1ac   :  { %v200_v40 = vadd.f32 %v519_v38, %v199_v39 }
 0x1ad   :  { %v564_v41 = vpop.f32.mrf.mxu1 }
 0x1ae   :  { %v203_v42 = vsel %vm96_vm3, %v200_v40, 0.0  ;;  %v211_v43 = vmul.f32 %v200_v40, %v200_v40 }
 0x1af   :  { %v204_v44 = vrot.slane %v203_v42, 4 }
 0x1b0   :  { %v212_v45 = vsel %vm96_vm3, %v211_v43, 0.0 }
 0x1b1   :  { %v205_v46 = vadd.f32 %v204_v44, %v203_v42  ;;  %v213_v47 = vrot.slane %v212_v45, 4  ;;  %v525_v42 = vld [vmem:[%s738_s1 + $0x8c] ss:$0 sm:$0xff] }
 0x1b3   :  { %v206_v48 = vrot.slane %v205_v46, 2  ;;  %v214_v49 = vadd.f32 %v213_v47, %v212_v45 }
 0x1b5   :  { %v207_v50 = vadd.f32 %v206_v48, %v205_v46  ;;  %v215_v51 = vrot.slane %v214_v49, 2 }
 0x1b7   :  { %v208_v52 = vrot.slane %v207_v50, 1  ;;  %v216_v53 = vadd.f32 %v215_v51, %v214_v49 }
 0x1b9   :  { %v209_v54 = vadd.f32 %v208_v52, %v207_v50  ;;  %v217_v55 = vrot.slane %v216_v53, 1 }
 0x1bb   :  { %v210_v56 = vmul.f32 0.125, %v209_v54  ;;  %v218_v57 = vadd.f32 %v217_v55, %v216_v53 }
 0x1bd   :  { %v219_v58 = vmul.f32 0.125, %v218_v57  ;;  %v220_v59 = vmul.f32 %v210_v56, %v210_v56  ;;  %v224_v62 = vsub.f32 %v200_v40, %v210_v56 }
 0x1bf   :  { %v221_v60 = vsub.f32 %v219_v58, %v220_v59 }
 0x1c1   :  { %v222_v61 = vadd.f32 1e-05, %v221_v60 }
 0x1c3   :  { %602 = vrsqrt.f32 %v222_v61 }
 0x1d0   :  { %v603_v63 = vpop.eup %602 }
 0x1d1   :  { %v225_v1 = vmul.f32 %v603_v63, %v224_v62 }
 0x1d3   :  { %574 = vmatmul.mubr.msk.f32.vlgmr.msra.gmra.mxu0 %vm96_vm3, %v225_v1 }
 0x1d4   :  { %595 = vmatprep.mubr.msk.f32.mxu0 %vm613_vm2, %v612_v0  ;;  %588 = vmatpush3.msra.mxu0 %v417_v33 }
 0x1d5   :  { %589 = vmatprep.subr.mxu0 %v612_v0 }
 0x1d6   :  { %590 = vmatpush3.msra.mxu0 %v416_v34 }
 0x1d7   :  { %591 = vmatprep.subr.mxu0 %v612_v0 }
 0x1d8   :  { %592 = vmatpush3.msra.mxu0 %v415_v35 }
 0x1d9   :  { %593 = vmatprep.subr.mxu0 %v612_v0 }
 0x1da   :  { %594 = vmatpush3.msra.mxu0 %v414_v36 }
 0x293   :  { %v304_v7 = vpop.f32.mrf.mxu0 }
 0x294   :  { %v305_v8 = vadd.f32 %v521_v6, %v304_v7 }
 0x295   :  { %v575_v9 = vpop.f32.mrf.mxu0 }
 0x296   :  { %v308_v10 = vsel %vm96_vm3, %v305_v8, 0.0  ;;  %v316_v11 = vmul.f32 %v305_v8, %v305_v8 }
 0x297   :  { %v309_v12 = vrot.slane %v308_v10, 4 }
 0x298   :  { %v317_v13 = vsel %vm96_vm3, %v316_v11, 0.0 }
 0x299   :  { %v310_v14 = vadd.f32 %v309_v12, %v308_v10  ;;  %v318_v15 = vrot.slane %v317_v13, 4 }
 0x29b   :  { %v311_v16 = vrot.slane %v310_v14, 2  ;;  %v319_v17 = vadd.f32 %v318_v15, %v317_v13 }
 0x29d   :  { %v312_v18 = vadd.f32 %v311_v16, %v310_v14  ;;  %v320_v19 = vrot.slane %v319_v17, 2 }
 0x29f   :  { %v313_v20 = vrot.slane %v312_v18, 1  ;;  %v321_v21 = vadd.f32 %v320_v19, %v319_v17 }
 0x2a1   :  { %v314_v22 = vadd.f32 %v313_v20, %v312_v18  ;;  %v322_v23 = vrot.slane %v321_v21, 1 }
 0x2a3   :  { %v315_v24 = vmul.f32 0.125, %v314_v22  ;;  %v323_v25 = vadd.f32 %v322_v23, %v321_v21 }
 0x2a5   :  { %v324_v26 = vmul.f32 0.125, %v323_v25  ;;  %v325_v27 = vmul.f32 %v315_v24, %v315_v24  ;;  %v329_v30 = vsub.f32 %v305_v8, %v315_v24 }
 0x2a7   :  { %v326_v28 = vsub.f32 %v324_v26, %v325_v27 }
 0x2a9   :  { %v327_v29 = vadd.f32 1e-05, %v326_v28 }
 0x2ab   :  { %604 = vrsqrt.f32 %v327_v29 }
 0x2b8   :  { %v605_v31 = vpop.eup %604 }
 0x2b9   :  { %v330_v32 = vmul.f32 %v605_v31, %v329_v30 }
 0x2bb   :  { %585 = vmatmul.mubr.msk.f32.vlgmr.msra.gmra.mxu1 %vm96_vm3, %v330_v32 }
 0x37b   :  { %v409_v38 = vpop.f32.mrf.mxu1 }
 0x37c   :  { %v410_v39 = vadd.f32 %v523_v37, %v409_v38 }
 0x37d   :  { %v586_v40 = vpop.f32.mrf.mxu1 }
 0x37e   :  { %606 = vtanh.f32 %v410_v39 }
 0x38b   :  { %v607_v41 = vpop.eup %606 }
 0x38c   :  { %596 = vmatmul.mubr.msk.f32.vlgmr.msra.gmra.mxu0 %vm96_vm3, %v607_v41 }
 0x44c   :  { %v492_v43 = vpop.f32.mrf.mxu0 }
 0x44d   :  { %v493_v44 = vadd.f32 %v525_v42, %v492_v43 }
 0x44e   :  { %v597_v45 = vpop.f32.mrf.mxu0 }
 0x44f   :  { %v497_v0 = vmin.f32 %v493_v44, 20.0  ;;  %vm496_vm6 = vcmp.gt.f32.partialorder %v493_v44, 20.0 }
 0x451   :  { %v498_v46 = vmul.f32 1.442695, %v497_v0 }
 0x453   :  { %608 = vpow2.f32 %v498_v46 }
 0x460   :  { %v609_v47 = vpop.eup %608 }
 0x461   :  { %v500_v48 = vadd.f32 1.0, %v609_v47  ;;  %v503_v49 = vmul.f32 -0.5, %v609_v47  ;;  %v506_v51 = vand.u32 2147483647, %v609_v47 }
 0x463   :  { %610 = vlog2.f32 %v500_v48  ;;  %v504_v50 = vadd.f32 1.0, %v503_v49  ;;  %vm507_vm4 = vcmp.lt.f32.partialorder %v506_v51, 0.0004427343 }
 0x465   :  { %v505_v54 = vmul.f32 %v609_v47, %v504_v50 }
 0x470   :  { %v611_v52 = vpop.eup %610 }
 0x471   :  { %v502_v53 = vmul.f32 0.6931472, %v611_v52 }
 0x473   :  { %v508_v55 = vsel %vm507_vm4, %v505_v54, %v502_v53 }
 0x474   :  { %v509_v56 = vsel %vm496_vm6, %v493_v44, %v508_v55 }
 0x475   :  { %511 = vst.msk [vmem:[%s740_s2] sm:$0xff] %vm510_vm5, %v509_v56 }

</bundles_post_ra>
